<compile_context>
chip_gen: v7x
topology: tpu7x:2x2x1
jax: 0.10.0
libtpu: 0.0.40
codegen_flags: <defaults>
</compile_context>

<pallas_src>
import functools

import jax
import jax.numpy as jnp
from jax.experimental import pallas as pl
from jax.experimental.pallas import tpu as pltpu


def _round_up(a, m):
    return ((a + m - 1) // m) * m


def _tcn_kernel(x_ref, w0_ref, wr_ref, bias_ref, mask_ref, sel_ref, fcw_ref, fcb_ref,
                out_ref, *, num_layers, fuse):
    # Slab layout (per sample block of lmax rows): local row 0 = causal left pad (zero),
    # rows 1..L hold activations, remaining rows stay zero (right pad / separator).
    xv = x_ref[0]                                       # (tot, cin0), host pre-padded
    dt = xv.dtype

    def conv(left, right, w):
        # left/right: (tot, c); w: (2c, hidden) with rows [0,c) = tap0, [c,2c) = tap1.
        if fuse:
            lhs = jnp.concatenate([left, right], axis=1)          # single K=2c MXU pass
            return jnp.dot(lhs, w, preferred_element_type=jnp.float32)
        c = left.shape[1]
        return (jnp.dot(left, w[:c], preferred_element_type=jnp.float32)
                + jnp.dot(right, w[c:], preferred_element_type=jnp.float32))

    right = xv
    left = pltpu.roll(xv, shift=1, axis=0)              # act[r-1]; wrap row feeds masked rows only
    h = xv
    for i in range(num_layers):                         # static, trace-time unrolled
        w = w0_ref[...] if i == 0 else wr_ref[i - 1]
        y = conv(left, right, w) + bias_ref[i]          # (tot, hidden), f32 accumulation
        # Re-zero pad/tail rows: ReLU(bias) there would corrupt later layers and the mean.
        h = (jnp.maximum(y, 0.0) * mask_ref[i]).astype(dt)
        # TODO(synk): nn.Dropout is identity in eval mode; training-mode masking not implemented.
        if i + 1 < num_layers:
            right = h
            left = pltpu.roll(h, shift=1, axis=0)

    # Epilogue: per-sample temporal sum via selector matmul (selector picks only valid rows),
    # then Linear. The 1/L_final mean scale is folded into fcw on the host.
    m = jnp.dot(sel_ref[...], h, preferred_element_type=jnp.float32)        # (b_tile, hidden)
    out = (jnp.dot(m.astype(fcw_ref.dtype), fcw_ref[...],
                   preferred_element_type=jnp.float32) + fcb_ref[...])      # (b_tile, out_pad)
    out_ref[0] = out.astype(out_ref.dtype)


def tcn_forward(x, conv_ws, conv_bs, fc_w, fc_b, *, hidden_size, output_size,
                compute_dtype=jnp.float32, b_tile=None, row_cap=1024):
    B, L0, input_size = x.shape
    num_layers = len(conv_ws)
    assert num_layers >= 1
    hid = hidden_size
    cin0 = input_size
    l_final = L0 + num_layers
    # Per-sample slab height: left-pad row + l_final activation rows + >=1 zero separator,
    # rounded up to a sublane multiple of 8.
    lmax = _round_up(l_final + 2, 8)
    # The roll-based left tap relies on each sample block having at least one trailing
    # masked row (so the wrapped/cross-sample row never feeds a valid output's left tap).
    assert lmax >= l_final + 2

    if b_tile is None:
        # NOTE: if lmax > row_cap (very long sequences) a single sample already exceeds the
        # intended slab cap; we accept tot = lmax in that case.
        b_cap = max(1, row_cap // lmax)
        b_tile = min(B, b_cap)
        if -(-B // b_tile) == 1 and B >= 2:
            b_tile = -(-B // 2)          # >= 2 grid steps so v7x's second TC gets work
        if b_tile >= 8:
            b_tile = (b_tile // 8) * 8   # 8-aligned sublane count for the output block
    num_tiles = -(-B // b_tile)
    b_pad = num_tiles * b_tile
    tot = b_tile * lmax
    out_pad = _round_up(output_size, 128)                # lane-dense output slab
    dt = compute_dtype
    nl1 = max(1, num_layers - 1)
    fuse = (2 * max(cin0, hid) <= 128)                   # fused taps stay within one lane tile

    # Weights: layer 0 gets its own (2*cin0, hid) slab (x is NOT channel-padded to hid);
    # layers 1.. share a (nl1, 2*hid, hid) stack.  Rows [0,c) = tap0^T, rows [c,2c) = tap1^T.
    w0 = jnp.concatenate([conv_ws[0][:, :, 0].T, conv_ws[0][:, :, 1].T], axis=0).astype(dt)
    if num_layers > 1:
        wr = jnp.stack([jnp.concatenate([w[:, :, 0].T, w[:, :, 1].T], axis=0)
                        for w in conv_ws[1:]]).astype(dt)
    else:
        wr = jnp.zeros((1, 2 * hid, hid), dt)            # unused dummy
    bias = jnp.stack(conv_bs).astype(jnp.float32).reshape(num_layers, 1, hid)

    # Grid-invariant masks/selector precomputed on host (constant-index inputs, DMA'd once).
    local = jnp.arange(tot, dtype=jnp.int32) % lmax
    l_outs = jnp.array([L0 + i + 1 for i in range(num_layers)], jnp.int32)
    mask = (((local[None, :] >= 1) & (local[None, :] <= l_outs[:, None]))
            .astype(jnp.float32))[:, :, None]            # (num_layers, tot, 1)
    rr = jnp.arange(tot, dtype=jnp.int32)[None, :]
    bb = jnp.arange(b_tile, dtype=jnp.int32)[:, None]
    sel = (((rr - bb * lmax) >= 1) & ((rr - bb * lmax) <= l_final)).astype(dt)  # (b_tile, tot)

    # Fold the temporal-mean 1/l_final into the fc weight; pad output lanes to out_pad.
    fcw = jnp.zeros((hid, out_pad), dt).at[:, :output_size].set((fc_w.T / l_final).astype(dt))
    fcb = jnp.zeros((1, out_pad), jnp.float32).at[0, :output_size].set(fc_b.astype(jnp.float32))

    # x slab: (num_tiles, tot, cin0); local row 0 zero (left pad), rows 1..L0 data, tail zero.
    xb = jnp.zeros((b_pad, lmax, cin0), dt)
    xb = xb.at[:B, 1:1 + L0, :].set(x.astype(dt))
    xp = xb.reshape(num_tiles, tot, cin0)

    kernel = functools.partial(_tcn_kernel, num_layers=num_layers, fuse=fuse)
    grid_spec = pltpu.PrefetchScalarGridSpec(
        num_scalar_prefetch=0,
        grid=(num_tiles,),
        in_specs=[
            pl.BlockSpec((1, tot, cin0), lambda t: (t, 0, 0)),            # x slab
            pl.BlockSpec((2 * cin0, hid), lambda t: (0, 0)),              # layer-0 weight
            pl.BlockSpec((nl1, 2 * hid, hid), lambda t: (0, 0, 0)),       # layer 1.. weights
            pl.BlockSpec((num_layers, 1, hid), lambda t: (0, 0, 0)),      # conv biases
            pl.BlockSpec((num_layers, tot, 1), lambda t: (0, 0, 0)),      # per-layer valid masks
            pl.BlockSpec((b_tile, tot), lambda t: (0, 0)),                # temporal-sum selector
            pl.BlockSpec((hid, out_pad), lambda t: (0, 0)),               # fc weight (pre-scaled)
            pl.BlockSpec((1, out_pad), lambda t: (0, 0)),                 # fc bias
        ],
        out_specs=pl.BlockSpec((1, b_tile, out_pad), lambda t: (t, 0, 0)),
    )
    out = pl.pallas_call(
        kernel,
        out_shape=jax.ShapeDtypeStruct((num_tiles, b_tile, out_pad), jnp.float32),
        grid_spec=grid_spec,
        compiler_params=pltpu.CompilerParams(dimension_semantics=("parallel",)),
    )(xp, w0, wr, bias, mask, sel, fcw, fcb)
    return out.reshape(b_pad, out_pad)[:B, :output_size]


def _ref_forward(x, conv_ws, conv_bs, fc_w, fc_b):
    """Pure-JAX reference mirroring the PyTorch forward (eval mode)."""
    h = jnp.transpose(x, (0, 2, 1))  # (B, C, L)
    for w, b in zip(conv_ws, conv_bs):
        L_out = h.shape[2] + 1
        hp = jnp.pad(h, ((0, 0), (0, 0), (1, 1)))
        out = (jnp.einsum('bcl,oc->bol', hp[:, :, :L_out], w[:, :, 0])
               + jnp.einsum('bcl,oc->bol', hp[:, :, 1:L_out + 1], w[:, :, 1])
               + b[None, :, None])
        h = jnp.maximum(out, 0.0)
    m = jnp.mean(h, axis=2)
    return m @ fc_w.T + fc_b


if __name__ == "__main__":
    input_size, hidden_size, output_size, num_layers = 8, 32, 16, 3
    B, L = 2, 16

    key = jax.random.PRNGKey(0)
    keys = jax.random.split(key, 2 * num_layers + 3)
    conv_ws, conv_bs = [], []
    for i in range(num_layers):
        cin = input_size if i == 0 else hidden_size
        conv_ws.append(0.1 * jax.random.normal(keys[2 * i], (hidden_size, cin, 2), jnp.float32))
        conv_bs.append(0.1 * jax.random.normal(keys[2 * i + 1], (hidden_size,), jnp.float32))
    fc_w = 0.1 * jax.random.normal(keys[-3], (output_size, hidden_size), jnp.float32)
    fc_b = 0.1 * jax.random.normal(keys[-2], (output_size,), jnp.float32)
    x = jax.random.normal(keys[-1], (B, L, input_size), jnp.float32)

    out = tcn_forward(x, conv_ws, conv_bs, fc_w, fc_b,
                      hidden_size=hidden_size, output_size=output_size)
    out = jax.block_until_ready(out)

    ref = _ref_forward(x, conv_ws, conv_bs, fc_w, fc_b)
    assert out.shape == (B, output_size)
    assert jnp.allclose(out, ref, atol=1e-4, rtol=1e-4), (out, ref)
    print("KERNEL_OK")
</pallas_src>

<mosaic_0001>
module attributes {stable_mosaic.version = 11 : i64} {
  func.func @_tcn_kernel(%arg0: i32, %arg1: memref<1x24x8xf32, #tpu.memory_space<vmem>>, %arg2: memref<16x32xf32, #tpu.memory_space<vmem>>, %arg3: memref<2x64x32xf32, #tpu.memory_space<vmem>>, %arg4: memref<3x1x32xf32, #tpu.memory_space<vmem>>, %arg5: memref<3x24x1xf32, #tpu.memory_space<vmem>>, %arg6: memref<1x24xf32, #tpu.memory_space<vmem>>, %arg7: memref<32x128xf32, #tpu.memory_space<vmem>>, %arg8: memref<1x128xf32, #tpu.memory_space<vmem>>, %arg9: memref<1x1x128xf32, #tpu.memory_space<vmem>>) attributes {dimension_semantics = [#tpu.dimension_semantics<parallel>], iteration_bounds = array<i64: 2>, scalar_prefetch = 0 : i64, scratch_operands = 0 : i64, tpu.core_type = #tpu.core_type<tc>, window_params = [{transform_indices = @transform_0, window_bounds = array<i64: 1, 24, 8>}, {pipeline_mode = #tpu.pipeline_mode<synchronous>, transform_indices = @transform_1, window_bounds = array<i64: 16, 32>}, {pipeline_mode = #tpu.pipeline_mode<synchronous>, transform_indices = @transform_2, window_bounds = array<i64: 2, 64, 32>}, {pipeline_mode = #tpu.pipeline_mode<synchronous>, transform_indices = @transform_3, window_bounds = array<i64: 3, 1, 32>}, {pipeline_mode = #tpu.pipeline_mode<synchronous>, transform_indices = @transform_4, window_bounds = array<i64: 3, 24, 1>}, {pipeline_mode = #tpu.pipeline_mode<synchronous>, transform_indices = @transform_5, window_bounds = array<i64: 1, 24>}, {pipeline_mode = #tpu.pipeline_mode<synchronous>, transform_indices = @transform_6, window_bounds = array<i64: 32, 128>}, {pipeline_mode = #tpu.pipeline_mode<synchronous>, transform_indices = @transform_7, window_bounds = array<i64: 1, 128>}, {transform_indices = @transform_8, window_bounds = array<i64: 1, 1, 128>}]} {
    %c0 = arith.constant 0 : index
    %c0_0 = arith.constant 0 : index
    %c0_1 = arith.constant 0 : index
    %0 = vector.load %arg1[%c0, %c0_0, %c0_1] : memref<1x24x8xf32, #tpu.memory_space<vmem>>, vector<1x24x8xf32>
    %1 = vector.shape_cast %0 : vector<1x24x8xf32> to vector<24x8xf32>
    %c1_i32 = arith.constant 1 : i32
    %2 = tpu.dynamic_rotate %1 by %c1_i32 dim 0 : vector<24x8xf32>, i32 -> vector<24x8xf32>
    %c0_2 = arith.constant 0 : index
    %c0_3 = arith.constant 0 : index
    %3 = vector.load %arg2[%c0_2, %c0_3] : memref<16x32xf32, #tpu.memory_space<vmem>>, vector<16x32xf32>
    %4 = tpu.concatenate %2, %1 in 1 : vector<24x8xf32>, vector<24x8xf32> -> vector<24x16xf32>
    %cst = arith.constant dense<0.000000e+00> : vector<24x32xf32>
    %5 = tpu.matmul %4, %3, %cst {dimension_numbers = #tpu.dot_dimension_numbers<[1], [0], [0], [1], [0, 0, 1, 1], [], []>} : vector<24x16xf32>, vector<16x32xf32>, vector<24x32xf32> -> vector<24x32xf32>
    %c0_4 = arith.constant 0 : index
    %c0_5 = arith.constant 0 : index
    %c0_6 = arith.constant 0 : index
    %6 = vector.load %arg4[%c0_4, %c0_5, %c0_6] : memref<3x1x32xf32, #tpu.memory_space<vmem>>, vector<1x1x32xf32>
    %7 = vector.shape_cast %6 : vector<1x1x32xf32> to vector<1x32xf32>
    %8 = vector.broadcast %7 : vector<1x32xf32> to vector<24x32xf32>
    %9 = arith.addf %5, %8 : vector<24x32xf32>
    %cst_7 = arith.constant 0.000000e+00 : f32
    %10 = vector.broadcast %cst_7 : f32 to vector<24x32xf32>
    %11 = arith.maximumf %9, %10 : vector<24x32xf32>
    %c0_8 = arith.constant 0 : index
    %c0_9 = arith.constant 0 : index
    %c0_10 = arith.constant 0 : index
    %12 = vector.load %arg5[%c0_8, %c0_9, %c0_10] : memref<3x24x1xf32, #tpu.memory_space<vmem>>, vector<1x24x1xf32>
    %13 = vector.shape_cast %12 : vector<1x24x1xf32> to vector<24x1xf32>
    %14 = vector.broadcast %13 : vector<24x1xf32> to vector<24x32xf32>
    %15 = arith.mulf %11, %14 : vector<24x32xf32>
    %c1_i32_11 = arith.constant 1 : i32
    %16 = tpu.dynamic_rotate %15 by %c1_i32_11 dim 0 : vector<24x32xf32>, i32 -> vector<24x32xf32>
    %c0_12 = arith.constant 0 : index
    %c0_13 = arith.constant 0 : index
    %c0_14 = arith.constant 0 : index
    %17 = vector.load %arg3[%c0_12, %c0_13, %c0_14] : memref<2x64x32xf32, #tpu.memory_space<vmem>>, vector<1x64x32xf32>
    %18 = vector.shape_cast %17 : vector<1x64x32xf32> to vector<64x32xf32>
    %19 = tpu.concatenate %16, %15 in 1 : vector<24x32xf32>, vector<24x32xf32> -> vector<24x64xf32>
    %cst_15 = arith.constant dense<0.000000e+00> : vector<24x32xf32>
    %20 = tpu.matmul %19, %18, %cst_15 {dimension_numbers = #tpu.dot_dimension_numbers<[1], [0], [0], [1], [0, 0, 1, 1], [], []>} : vector<24x64xf32>, vector<64x32xf32>, vector<24x32xf32> -> vector<24x32xf32>
    %c1 = arith.constant 1 : index
    %c0_16 = arith.constant 0 : index
    %c0_17 = arith.constant 0 : index
    %21 = vector.load %arg4[%c1, %c0_16, %c0_17] : memref<3x1x32xf32, #tpu.memory_space<vmem>>, vector<1x1x32xf32>
    %22 = vector.shape_cast %21 : vector<1x1x32xf32> to vector<1x32xf32>
    %23 = vector.broadcast %22 : vector<1x32xf32> to vector<24x32xf32>
    %24 = arith.addf %20, %23 : vector<24x32xf32>
    %cst_18 = arith.constant 0.000000e+00 : f32
    %25 = vector.broadcast %cst_18 : f32 to vector<24x32xf32>
    %26 = arith.maximumf %24, %25 : vector<24x32xf32>
    %c1_19 = arith.constant 1 : index
    %c0_20 = arith.constant 0 : index
    %c0_21 = arith.constant 0 : index
    %27 = vector.load %arg5[%c1_19, %c0_20, %c0_21] : memref<3x24x1xf32, #tpu.memory_space<vmem>>, vector<1x24x1xf32>
    %28 = vector.shape_cast %27 : vector<1x24x1xf32> to vector<24x1xf32>
    %29 = vector.broadcast %28 : vector<24x1xf32> to vector<24x32xf32>
    %30 = arith.mulf %26, %29 : vector<24x32xf32>
    %c1_i32_22 = arith.constant 1 : i32
    %31 = tpu.dynamic_rotate %30 by %c1_i32_22 dim 0 : vector<24x32xf32>, i32 -> vector<24x32xf32>
    %c1_23 = arith.constant 1 : index
    %c0_24 = arith.constant 0 : index
    %c0_25 = arith.constant 0 : index
    %32 = vector.load %arg3[%c1_23, %c0_24, %c0_25] : memref<2x64x32xf32, #tpu.memory_space<vmem>>, vector<1x64x32xf32>
    %33 = vector.shape_cast %32 : vector<1x64x32xf32> to vector<64x32xf32>
    %34 = tpu.concatenate %31, %30 in 1 : vector<24x32xf32>, vector<24x32xf32> -> vector<24x64xf32>
    %cst_26 = arith.constant dense<0.000000e+00> : vector<24x32xf32>
    %35 = tpu.matmul %34, %33, %cst_26 {dimension_numbers = #tpu.dot_dimension_numbers<[1], [0], [0], [1], [0, 0, 1, 1], [], []>} : vector<24x64xf32>, vector<64x32xf32>, vector<24x32xf32> -> vector<24x32xf32>
    %c2 = arith.constant 2 : index
    %c0_27 = arith.constant 0 : index
    %c0_28 = arith.constant 0 : index
    %36 = vector.load %arg4[%c2, %c0_27, %c0_28] : memref<3x1x32xf32, #tpu.memory_space<vmem>>, vector<1x1x32xf32>
    %37 = vector.shape_cast %36 : vector<1x1x32xf32> to vector<1x32xf32>
    %38 = vector.broadcast %37 : vector<1x32xf32> to vector<24x32xf32>
    %39 = arith.addf %35, %38 : vector<24x32xf32>
    %cst_29 = arith.constant 0.000000e+00 : f32
    %40 = vector.broadcast %cst_29 : f32 to vector<24x32xf32>
    %41 = arith.maximumf %39, %40 : vector<24x32xf32>
    %c2_30 = arith.constant 2 : index
    %c0_31 = arith.constant 0 : index
    %c0_32 = arith.constant 0 : index
    %42 = vector.load %arg5[%c2_30, %c0_31, %c0_32] : memref<3x24x1xf32, #tpu.memory_space<vmem>>, vector<1x24x1xf32>
    %43 = vector.shape_cast %42 : vector<1x24x1xf32> to vector<24x1xf32>
    %44 = vector.broadcast %43 : vector<24x1xf32> to vector<24x32xf32>
    %45 = arith.mulf %41, %44 : vector<24x32xf32>
    %c0_33 = arith.constant 0 : index
    %c0_34 = arith.constant 0 : index
    %46 = vector.load %arg6[%c0_33, %c0_34] : memref<1x24xf32, #tpu.memory_space<vmem>>, vector<1x24xf32>
    %cst_35 = arith.constant dense<0.000000e+00> : vector<1x32xf32>
    %47 = tpu.matmul %46, %45, %cst_35 {dimension_numbers = #tpu.dot_dimension_numbers<[1], [0], [0], [1], [0, 0, 1, 1], [], []>} : vector<1x24xf32>, vector<24x32xf32>, vector<1x32xf32> -> vector<1x32xf32>
    %c0_36 = arith.constant 0 : index
    %c0_37 = arith.constant 0 : index
    %48 = vector.load %arg7[%c0_36, %c0_37] : memref<32x128xf32, #tpu.memory_space<vmem>>, vector<32x128xf32>
    %cst_38 = arith.constant dense<0.000000e+00> : vector<1x128xf32>
    %49 = tpu.matmul %47, %48, %cst_38 {dimension_numbers = #tpu.dot_dimension_numbers<[1], [0], [0], [1], [0, 0, 1, 1], [], []>} : vector<1x32xf32>, vector<32x128xf32>, vector<1x128xf32> -> vector<1x128xf32>
    %c0_39 = arith.constant 0 : index
    %c0_40 = arith.constant 0 : index
    %50 = vector.load %arg8[%c0_39, %c0_40] : memref<1x128xf32, #tpu.memory_space<vmem>>, vector<1x128xf32>
    %51 = arith.addf %49, %50 : vector<1x128xf32>
    %c0_41 = arith.constant 0 : index
    %c0_42 = arith.constant 0 : index
    %c0_43 = arith.constant 0 : index
    %52 = vector.load %arg9[%c0_41, %c0_42, %c0_43] : memref<1x1x128xf32, #tpu.memory_space<vmem>>, vector<1x1x128xf32>
    %53 = vector.shape_cast %52 : vector<1x1x128xf32> to vector<1x128xf32>
    %54 = vector.shape_cast %51 : vector<1x128xf32> to vector<1x1x128xf32>
    tpu.vector_store %arg9[%c0_41, %c0_42, %c0_43], %54 {strides = array<i32>} : memref<1x1x128xf32, #tpu.memory_space<vmem>>, vector<1x1x128xf32>,
    return
  }
  func.func @transform_0(%arg0: i32) -> (i32, i32, i32) {
    %c0_i32 = arith.constant 0 : i32
    %c0_i32_0 = arith.constant 0 : i32
    %c0_i32_1 = arith.constant 0 : i32
    return %arg0, %c0_i32, %c0_i32_0 : i32, i32, i32
  }
  func.func @transform_1(%arg0: i32) -> (i32, i32) {
    %c0_i32 = arith.constant 0 : i32
    %c0_i32_0 = arith.constant 0 : i32
    %c0_i32_1 = arith.constant 0 : i32
    return %c0_i32, %c0_i32_0 : i32, i32
  }
  func.func @transform_2(%arg0: i32) -> (i32, i32, i32) {
    %c0_i32 = arith.constant 0 : i32
    %c0_i32_0 = arith.constant 0 : i32
    %c0_i32_1 = arith.constant 0 : i32
    %c0_i32_2 = arith.constant 0 : i32
    return %c0_i32, %c0_i32_0, %c0_i32_1 : i32, i32, i32
  }
  func.func @transform_3(%arg0: i32) -> (i32, i32, i32) {
    %c0_i32 = arith.constant 0 : i32
    %c0_i32_0 = arith.constant 0 : i32
    %c0_i32_1 = arith.constant 0 : i32
    %c0_i32_2 = arith.constant 0 : i32
    return %c0_i32, %c0_i32_0, %c0_i32_1 : i32, i32, i32
  }
  func.func @transform_4(%arg0: i32) -> (i32, i32, i32) {
    %c0_i32 = arith.constant 0 : i32
    %c0_i32_0 = arith.constant 0 : i32
    %c0_i32_1 = arith.constant 0 : i32
    %c0_i32_2 = arith.constant 0 : i32
    return %c0_i32, %c0_i32_0, %c0_i32_1 : i32, i32, i32
  }
  func.func @transform_5(%arg0: i32) -> (i32, i32) {
    %c0_i32 = arith.constant 0 : i32
    %c0_i32_0 = arith.constant 0 : i32
    %c0_i32_1 = arith.constant 0 : i32
    return %c0_i32, %c0_i32_0 : i32, i32
  }
  func.func @transform_6(%arg0: i32) -> (i32, i32) {
    %c0_i32 = arith.constant 0 : i32
    %c0_i32_0 = arith.constant 0 : i32
    %c0_i32_1 = arith.constant 0 : i32
    return %c0_i32, %c0_i32_0 : i32, i32
  }
  func.func @transform_7(%arg0: i32) -> (i32, i32) {
    %c0_i32 = arith.constant 0 : i32
    %c0_i32_0 = arith.constant 0 : i32
    %c0_i32_1 = arith.constant 0 : i32
    return %c0_i32, %c0_i32_0 : i32, i32
  }
  func.func @transform_8(%arg0: i32) -> (i32, i32, i32) {
    %c0_i32 = arith.constant 0 : i32
    %c0_i32_0 = arith.constant 0 : i32
    %c0_i32_1 = arith.constant 0 : i32
    return %arg0, %c0_i32, %c0_i32_0 : i32, i32, i32
  }
}

</mosaic_0001>

<bundles_post_ra>
// kernel: tpu_custom_call.1
= control target key start
LH: loop header
LB: loop body
LE: loop exit
PB: predicated region body
PF: predicated region fallthrough
CT: control target
= control target key end

     0   :  { %13 = vsyncpa [#allocation3], 0  ;;  %s1621_s0 = inlined_call_operand.vmem [shape: f32[2,24,8], index: 0, kind: input, shape index: {}]   ;;  %s1622_s1 = inlined_call_operand.vmem [shape: f32[16,32], index: 1, kind: input, shape index: {}]   ;;  %s1623_s2 = inlined_call_operand.vmem [shape: f32[2,64,32], index: 2, kind: input, shape index: {}]   ;;  %s1624_s3 = inlined_call_operand.vmem [shape: f32[3,1,32], index: 3, kind: input, shape index: {}]   ;;  %s1625_s4 = inlined_call_operand.vmem [shape: f32[3,24,1], index: 4, kind: input, shape index: {}]   ;;  %s1626_s5 = inlined_call_operand.vmem [shape: f32[1,24], index: 5, kind: input, shape index: {}]   ;;  %s1627_s6 = inlined_call_operand.vmem [shape: f32[32,128], index: 6, kind: input, shape index: {}]   ;;  %s1628_s7 = inlined_call_operand.vmem [shape: f32[1,128], index: 7, kind: input, shape index: {}]   ;;  %s1629_s8 = inlined_call_operand.hbm [shape: f32[2,1,128], index: 8, kind: output, shape index: {}]  }
   0x1   :  { %15 = vsyncpa [#allocation3 + $0x1], 0  ;;  %s1338_s27 = smov 0   ;;  %s1340_s28 = smov 0  }
   0x2   :  { %s1342_s29 = smov 0   ;;  %s1344_s30 = smov 0  }
   0x3 LB: > { %s1359_s9 = sadd.s32 4294967295, %s1284_s30   ;;  %s981_s10 = sadd.s32 4294967294, %s1284_s30   ;;  %s1284_s30 = sphi %s1344_s30, %s1635_s30   ;;  %s1280_s29 = sphi %s1342_s29, %s1634_s29   ;;  %s1276_s28 = sphi %s1340_s28, %s1633_s28   ;;  %s1272_s27 = sphi %s1338_s27, %s1632_s27  }
   0x4   : > { %s1363_s11 = sadd.s32 1, %s1284_s30   ;;  %s201_s12 = sadd.s32 1, %s1280_s29 }
   0x5   : > { %s198_s13 = ssub.s32 %s1284_s30, %s1363_s11  ;;  %p211_p0 = scmp.ne.s32.totalorder %s1280_s29, %s1276_s28 }
   0x6   : > { %p199_p1 = scmp.eq.s32.totalorder %s198_s13, 0  ;;  %p212_p2 = scmp.eq.s32.totalorder %s1359_s9, 1 }
   0x7   : > { %p217_p3 = scmp.ne.s32.totalorder %s1276_s28, %s1272_s27  ;;  %p218_p4 = scmp.eq.s32.totalorder %s981_s10, 1 }
   0x8   : > { %s1374_s14 = scalar_select %p199_p1, %s1280_s29, %s201_s12  }
   0x9   : > { %p1376_p5 = por %p212_p2, %p211_p0  ;;  %p1380_p6 = por %p218_p4, %p217_p3 }
   0xa   : > { %p984_p7 = scmp.ge.s32.totalorder %s1284_s30, 1  ;;  %p265_p8 = scmp.lt.s32.totalorder %s1284_s30, 3 }
   0xc   : > { %p266_p9 = pnand %p984_p7, %p265_p8 }
   0xd   : > { %p298_p10 = scmp.lt.s32.totalorder (!%p266_p9), %s1359_s9, 1  ;;  %v315_v0 = vld [vmem:[%s1622_s1] sm:$0xff] (!%p266_p9)  ;;  %v316_v1 = vld [vmem:[%s1622_s1 + $0x8] sm:$0xff] (!%p266_p9)  ;;  %v309_v2 = vlaneseq (!%p266_p9)  ;;  %v1286_v3 = vmov (!%p266_p9), 0.0|0.0   ;;  %vm1287_vm0 = vmmov (!%p266_p9), 0   ;;  %v1288_v5 = vmov (!%p266_p9), 0.0  }
   0xe   : > { %269 = sbr.rel (%p266_p9) target bundleno = 1480 (0x5c8), region = 52  ;;  %1138 = vmatprep.subr.bf16.mxu0 (!%p266_p9), %v1286_v3  ;;  %v1139_v4 = vpack.c.bf16 (!%p266_p9), %v316_v1, %v315_v0  ;;  %1141 = vmatprep.subr.bf16.mxu1 (!%p266_p9), %v1286_v3  ;;  %v1289_v7 = vmov (!%p266_p9), 0   ;;  %s1290_s26 = smov (!%p266_p9), 8   ;;  %v433_v14 = vld [vmem:[%s1625_s4] sm:$0xff] (!%p266_p9)  ;;  %v435_v18 = vld [vmem:[%s1625_s4 + $0x10] sm:$0xff] (!%p266_p9)  ;;  %v434_v19 = vld [vmem:[%s1625_s4 + $0x8] sm:$0xff] (!%p266_p9) }
   0xf   : > { %1059 = vmatprep.mubr.msk.f32.mxu0 (!%p266_p9), %vm1287_vm0, %v1288_v5  ;;  %1084 = vmatprep.mubr.msk.f32.mxu1 (!%p266_p9), %vm1287_vm0, %v1288_v5  ;;  %v1400_v6 = vshrl.u32 (!%p266_p9), %v309_v2, 7  ;;  %vm329_vm2 = vcmask (!%p266_p9), 64512   ;;  %vm340_vm3 = vcmask (!%p266_p9), 130048   ;;  %v460_v26 = vld [vmem:[%s1623_s2] sm:$0xff] (!%p266_p9)  ;;  %v461_v27 = vld [vmem:[%s1623_s2 + $0x8] sm:$0xff] (!%p266_p9)  ;;  %v462_v28 = vld [vmem:[%s1623_s2 + $0x10] sm:$0xff] (!%p266_p9) }
  0x10   : > { %1140 = vmatpush3.bf16.msra.mxu0 (!%p266_p9), %v1139_v4  ;;  %1220 = vset.pattern.permute.xlu1 (!%p266_p9), %v1289_v7  ;;  %v1142_v29 = vpack.c.bf16 (!%p266_p9), %v461_v27, %v460_v26  ;;  %v463_v30 = vld [vmem:[%s1623_s2 + $0x18] sm:$0xff] (!%p266_p9)  ;;  %v464_v32 = vld [vmem:[%s1623_s2 + $0x20] sm:$0xff] (!%p266_p9)  ;;  %v465_v33 = vld [vmem:[%s1623_s2 + $0x28] sm:$0xff] (!%p266_p9)  ;;  %vm480_vm4 = vcmask (!%p266_p9), 261120   ;;  %vm492_vm5 = vcmask (!%p266_p9), 523264   ;;  %vm760_vm6 = vcmask (!%p266_p9), 195584  }
  0x11   : > { %1153 = vmatprep.subr.bf16.mxu0 (!%p266_p9), %v1286_v3  ;;  %1221 = vset.pattern.permute.xlu0 (!%p266_p9), %v1289_v7  ;;  %vm311_vm1 = vcmp.lt.s32.totalorder (!%p266_p9), %v1400_v6, 1  ;;  %v1145_v31 = vpack.c.bf16 (!%p266_p9), %v463_v30, %v462_v28  ;;  %v1148_v34 = vpack.c.bf16 (!%p266_p9), %v465_v33, %v464_v32  ;;  %v466_v35 = vld [vmem:[%s1623_s2 + $0x30] sm:$0xff] (!%p266_p9)  ;;  %v467_v36 = vld [vmem:[%s1623_s2 + $0x38] sm:$0xff] (!%p266_p9)  ;;  %v986_v38 = vld [vmem:[%s1624_s3] ss:$0 sm:$0xff] (!%p266_p9)  ;;  %s296_s18 = sand.u32 (!%p266_p9), 1, %s1276_s28  }
  0x12   : > { %1143 = vmatpush3.bf16.msra.mxu1 (!%p266_p9), %v1142_v29  ;;  %v1151_v37 = vpack.c.bf16 (!%p266_p9), %v467_v36, %v466_v35  ;;  %v995_v58 = vld [vmem:[%s1625_s4 + $0x18] sm:$0xff] (!%p266_p9)  ;;  %v997_v62 = vld [vmem:[%s1625_s4 + $0x28] sm:$0xff] (!%p266_p9)  ;;  %v996_v63 = vld [vmem:[%s1625_s4 + $0x20] sm:$0xff] (!%p266_p9)  ;;  %s1016_s20 = sshll.u32 (!%p266_p9), %s1359_s9, 4  ;;  %s914_s10 = scalar_lea.sflag (!%p266_p9), [#allocation3], %s296_s18 }
  0x13   : > { %1144 = vmatprep.subr.bf16.mxu1 (!%p266_p9), %v1286_v3 }
  0x15   : > { %s299_s21 = scalar_select %p298_p10, %s1359_s9, 1 }
  0x16   : > { %1146 = vmatpush3.bf16.msra.mxu1 %v1145_v31  ;;  %s1292_s9 = smov [#allocation2]  }
  0x17   : > { %s1174_s22 = smul.u32 24, %s299_s21  ;;  %1147 = vmatprep.subr.bf16.mxu1 %v1286_v3  ;;  %s297_s21 = scalar_lea.vmem [#allocation2], %s296_s18 }
  0x18   : > { %s1226_s13 = sshll.u32 %s1292_s9, 4  ;;  %s1227_s13 = int_to_ptr.vmem [resolvable:$false] %s1226_s13 }
  0x19   : > { %s302_s25 = scalar_lea.vmem %s1621_s0, %s1174_s22  ;;  %s926_s22 = sshll.u32 %s297_s21, 4  ;;  %s1581_s22 = int_to_ptr.vmem [resolvable:$true] %s926_s22 }
  0x1a   : > { %v303_v8 = vld [vmem:[%s302_s25] sm:$0xff]  ;;  %v304_v9 = vld [vmem:[%s302_s25 + $0x8] sm:$0xff]  ;;  %v305_v10 = vld [vmem:[%s302_s25 + $0x10] sm:$0xff]  ;;  %1149 = vmatpush3.bf16.msra.mxu1 %v1148_v34  ;;  %s1291_s25 = smov 32   ;;  %s1222_s12 = scalar_lea.vmem %s1581_s22, 16 }
  0x1b   : > { %320 = vrot.lane.b32.xlu0 %v303_v8, %s1290_s26  ;;  %v306_v11 = vrot.slane %v303_v8, 7  ;;  %v307_v12 = vrot.slane %v304_v9, 7  ;;  %324 = vrot.lane.b32.xlu1 %v305_v10, %s1290_s26  ;;  %v308_v13 = vrot.slane %v305_v10, 7  ;;  %p1223_p11 = scmp.ne.s32.totalorder %s1581_s22, %s1222_s12  ;;  %s1228_s17 = scalar_lea.vmem %s1227_s13, 32 }
  0x1c   : > { %1150 = vmatprep.subr.bf16.mxu1 %v1286_v3  ;;  %p1229_p0 = scmp.lt.s32.totalorder %s1581_s22, %s1227_s13  ;;  %p1230_p1 = scmp.lt.s32.totalorder %s1228_s17, %s1222_s12 }
  0x1d   : > { %v314_v15 = vsel %vm311_vm1, %v308_v13, %v306_v11  ;;  %v313_v16 = vsel %vm311_vm1, %v306_v11, %v307_v12  ;;  %v312_v17 = vsel %vm311_vm1, %v307_v12, %v308_v13  ;;  %v998_v11 = vld [vmem:[%s1623_s2 + $0x40] sm:$0xff]  ;;  %v999_v12 = vld [vmem:[%s1623_s2 + $0x48] sm:$0xff]  ;;  %v1000_v13 = vld [vmem:[%s1623_s2 + $0x50] sm:$0xff]  ;;  %p1224_p12 = pnand %p1223_p11, %p1376_p5 }
  0x1e   : > { %1152 = vmatpush3.bf16.msra.mxu1 %v1151_v37  ;;  %p1231_p2 = por %p1230_p1, %p1229_p0 }
  0x1f   : > { %322 = vrot.lane.b32.xlu0 %v304_v9, %s1290_s26  ;;  %438 = vperm.xlu1 %1220, %v433_v14   ;;  %v1154_v14 = vpack.c.bf16 %v999_v12, %v998_v11  ;;  %s1579_s26 = scalar_lea.hbm %s1629_s8, %s1016_s20  ;;  %p1225_p13 = pneg %p1224_p12 }
  0x20   : > { %1165 = vmatprep.subr.bf16.mxu1 %v1286_v3 }
  0x21   : > { %p1232_p3 = pnand %p1231_p2, %p1225_p13 }
  0x23   : > { %448 = vperm.xlu1 %1220, %v435_v18   ;;  %443 = vperm.xlu0 %1221, %v434_v19   ;;  %v1003_v18 = vld [vmem:[%s1623_s2 + $0x68] sm:$0xff] }
  0x8d   : > { %v321_v20 = vpop.permute.xlu0 %320  ;;  %v325_v23 = vpop.permute.xlu1 %324 }
  0x8e   : > { %v330_v21 = vsel %vm329_vm2, %v314_v15, %v321_v20  ;;  %v332_v25 = vsel %vm329_vm2, %v312_v17, %v325_v23  ;;  %v1001_v15 = vld [vmem:[%s1623_s2 + $0x58] sm:$0xff]  ;;  %v1002_v17 = vld [vmem:[%s1623_s2 + $0x60] sm:$0xff]  ;;  %v1004_v20 = vld [vmem:[%s1623_s2 + $0x70] sm:$0xff] }
  0x8f   : > { %1060 = vmatmul.mubr.msk.f32.vlgmr.msra.gmra.mrb[0].mxu0 %vm340_vm3, %v330_v21  ;;  %v1160_v19 = vpack.c.bf16 %v1003_v18, %v1002_v17  ;;  %v1005_v21 = vld [vmem:[%s1623_s2 + $0x78] sm:$0xff]  ;;  %v991_v23 = vld [vmem:[%s1624_s3 + $0x1] ss:$0 sm:$0xff] }
  0x90   : > { %1062 = vmatprep.mubr.msk.f32.mxu0 %vm1287_vm0, %v1288_v5  ;;  %1155 = vmatpush3.bf16.msra.mxu0 %v1154_v14 }
  0x91   : > { %v323_v22 = vpop.permute.xlu0 %322  ;;  %1156 = vmatprep.subr.bf16.mxu0 %v1286_v3 }
  0x92   : > { %v331_v24 = vsel %vm329_vm2, %v313_v16, %v323_v22  ;;  %v1157_v16 = vpack.c.bf16 %v1001_v15, %v1000_v13  ;;  %v1163_v22 = vpack.c.bf16 %v1005_v21, %v1004_v20  ;;  %v759_v20 = vld [vmem:[%s1626_s5] sm:$0x1] }
  0x93   : > { %1063 = vmatmul.mubr.msk.f32.gmra.mrb[2].mxu0 %vm340_vm3, %v331_v24 }
  0x94   : > { %1065 = vmatprep.mubr.msk.f32.mxu0 %vm1287_vm0, %v1288_v5  ;;  %1158 = vmatpush3.bf16.msra.mxu0 %v1157_v16 }
  0x95   : > { %1159 = vmatprep.subr.bf16.mxu0 %v1286_v3 }
  0x97   : > { %1066 = vmatmul.mubr.msk.f32.gmra.mrb[4].mxu0 %vm340_vm3, %v332_v25 }
  0x98   : > { %1109 = vmatprep.mubr.msk.f32.mxu0 %vm1287_vm0, %v1288_v5  ;;  %1161 = vmatpush3.bf16.msra.mxu0 %v1160_v19 }
  0x99   : > { %1162 = vmatprep.subr.bf16.mxu0 %v1286_v3 }
  0x9c   : > { %1164 = vmatpush3.bf16.msra.mxu0 %v1163_v22 }
  0x9d   : > { %1168 = vmatprep.subr.bf16.mxu0 %v1286_v3 }
  0x9e   : > { %v439_v43 = vpop.permute.xlu1 %438 }
  0xa2   : > { %v444_v48 = vpop.permute.xlu0 %443  ;;  %v449_v57 = vpop.permute.xlu1 %448 }
 0x162   : > { %v416_v39 = vpop.f32.mrb[0].mxu0 }
 0x163   : > { %v417_v40 = vadd.f32 %v986_v38, %v416_v39  ;;  %v1061_v41 = vpop.f32.mrb[1].mxu0 }
 0x165   : > { %v430_v42 = vmax.f32 %v417_v40, 0.0 }
 0x166   : > { %v421_v44 = vpop.f32.mrb[2].mxu0 }
 0x167   : > { %v451_v45 = vmul.f32 %v439_v43, %v430_v42  ;;  %v422_v46 = vadd.f32 %v986_v38, %v421_v44  ;;  %v1064_v47 = vpop.f32.mrb[3].mxu0  ;;  %v1011_v43 = vld [vmem:[%s1625_s4 + $0x30] sm:$0xff] }
 0x168   : > { %v1013_v47 = vld [vmem:[%s1625_s4 + $0x40] sm:$0xff] }
 0x169   : > { %v431_v49 = vmax.f32 %v422_v46, 0.0  ;;  %471 = vrot.lane.b32.xlu1 %v451_v45, %s1291_s25  ;;  %v454_v54 = vrot.slane %v451_v45, 7 }
 0x16a   : > { %v426_v50 = vpop.f32.mrb[4].mxu0 }
 0x16b   : > { %v452_v51 = vmul.f32 %v444_v48, %v431_v49  ;;  %v427_v52 = vadd.f32 %v986_v38, %v426_v50  ;;  %v1067_v53 = vpop.f32.mrb[5].mxu0  ;;  %v1012_v48 = vld [vmem:[%s1625_s4 + $0x38] sm:$0xff] }
 0x16d   : > { %v455_v55 = vrot.slane %v452_v51, 7  ;;  %v432_v56 = vmax.f32 %v427_v52, 0.0  ;;  %473 = vrot.lane.b32.xlu0 %v452_v51, %s1291_s25 }
 0x16f   : > { %v453_v59 = vmul.f32 %v449_v57, %v432_v56  ;;  %v458_v60 = vsel %vm311_vm1, %v454_v54, %v455_v55  ;;  %v834_v56 = vld [vmem:[%s1627_s6] sm:$0xff]  ;;  %v835_v57 = vld [vmem:[%s1627_s6 + $0x8] sm:$0xff] }
 0x171   : > { %v456_v61 = vrot.slane %v453_v59, 7  ;;  %591 = vperm.xlu0 %1221, %v995_v58   ;;  %475 = vrot.lane.b32.xlu1 %v453_v59, %s1291_s25  ;;  %v836_v58 = vld [vmem:[%s1627_s6 + $0x10] sm:$0xff]  ;;  %v1169_v59 = vpack.c.bf16 %v835_v57, %v834_v56 }
 0x173   : > { %v459_v0 = vsel %vm311_vm1, %v456_v61, %v454_v54  ;;  %v457_v1 = vsel %vm311_vm1, %v455_v55, %v456_v61 }
 0x175   : > { %601 = vperm.xlu0 %1221, %v997_v62   ;;  %596 = vperm.xlu1 %1220, %v996_v63   ;;  %v1007_v62 = vld [vmem:[%s1624_s3 + $0x2] ss:$0 sm:$0xff] }
 0x1db   : > { %v472_v2 = vpop.permute.xlu1 %471 }
 0x1dc   : > { %v481_v4 = vsel %vm480_vm4, %v459_v0, %v472_v2 }
 0x1dd   : > { %1085 = vmatmul.mubr.msk.f32.vlgmr.msra.gmra.mrb[0].mxu1 %vm492_vm5, %v481_v4 }
 0x1de   : > { %1087 = vmatprep.mubr.msk.f32.mxu1 %vm1287_vm0, %v1288_v5 }
 0x1df   : > { %v474_v7 = vpop.permute.xlu0 %473 }
 0x1e0   : > { %v482_v8 = vsel %vm480_vm4, %v458_v60, %v474_v7  ;;  %v837_v60 = vld [vmem:[%s1627_s6 + $0x18] sm:$0xff] }
 0x1e1   : > { %1088 = vmatmul.mubr.msk.f32.gmra.mrb[2].mxu1 %vm492_vm5, %v482_v8  ;;  %v1172_v61 = vpack.c.bf16 %v837_v60, %v836_v58 }
 0x1e2   : > { %1090 = vmatprep.mubr.msk.f32.mxu1 %vm1287_vm0, %v1288_v5 }
 0x1e3   : > { %v476_v9 = vpop.permute.xlu1 %475 }
 0x1e4   : > { %v483_v10 = vsel %vm480_vm4, %v457_v1, %v476_v9 }
 0x1e5   : > { %1091 = vmatmul.mubr.msk.f32.gmra.mrb[4].mxu1 %vm492_vm5, %v483_v10 }
 0x1e6   : > { %1124 = vmatprep.mubr.msk.f32.mxu1 %vm1287_vm0, %v1288_v5 }
 0x1f0   : > { %v592_v28 = vpop.permute.xlu0 %591 }
 0x1f4   : > { %v597_v34 = vpop.permute.xlu1 %596  ;;  %v602_v42 = vpop.permute.xlu0 %601 }
 0x2b0   : > { %v568_v24 = vpop.f32.mrb[0].mxu1 }
 0x2b1   : > { %v569_v25 = vadd.f32 %v991_v23, %v568_v24  ;;  %v1086_v26 = vpop.f32.mrb[1].mxu1 }
 0x2b3   : > { %v582_v27 = vmax.f32 %v569_v25, 0.0 }
 0x2b4   : > { %v573_v29 = vpop.f32.mrb[2].mxu1 }
 0x2b5   : > { %v604_v30 = vmul.f32 %v592_v28, %v582_v27  ;;  %v574_v31 = vadd.f32 %v991_v23, %v573_v29  ;;  %v1089_v32 = vpop.f32.mrb[3].mxu1 }
 0x2b7   : > { %v583_v33 = vmax.f32 %v574_v31, 0.0  ;;  %625 = vrot.lane.b32.xlu1 %v604_v30, %s1291_s25  ;;  %v607_v39 = vrot.slane %v604_v30, 7 }
 0x2b8   : > { %v578_v35 = vpop.f32.mrb[4].mxu1 }
 0x2b9   : > { %v605_v36 = vmul.f32 %v597_v34, %v583_v33  ;;  %v579_v37 = vadd.f32 %v991_v23, %v578_v35  ;;  %v1092_v38 = vpop.f32.mrb[5].mxu1  ;;  %v838_v23 = vld [vmem:[%s1628_s7] sm:$0x1] }
 0x2bb   : > { %v608_v40 = vrot.slane %v605_v36, 7  ;;  %v584_v41 = vmax.f32 %v579_v37, 0.0  ;;  %627 = vrot.lane.b32.xlu0 %v605_v36, %s1291_s25 }
 0x2bd   : > { %v606_v44 = vmul.f32 %v602_v42, %v584_v41  ;;  %v611_v45 = vsel %vm311_vm1, %v607_v39, %v608_v40 }
 0x2bf   : > { %v609_v46 = vrot.slane %v606_v44, 7  ;;  %743 = vperm.xlu0 %1221, %v1011_v43   ;;  %629 = vrot.lane.b32.xlu1 %v606_v44, %s1291_s25 }
 0x2c1   : > { %v612_v49 = vsel %vm311_vm1, %v609_v46, %v607_v39  ;;  %v610_v50 = vsel %vm311_vm1, %v608_v40, %v609_v46 }
 0x2c3   : > { %753 = vperm.xlu0 %1221, %v1013_v47   ;;  %748 = vperm.xlu1 %1220, %v1012_v48  }
 0x329   : > { %v626_v51 = vpop.permute.xlu1 %625 }
 0x32a   : > { %v634_v52 = vsel %vm480_vm4, %v612_v49, %v626_v51 }
 0x32b   : > { %1110 = vmatmul.mubr.msk.f32.vlgmr.msra.gmra.mrb[6].mxu0 %vm492_vm5, %v634_v52 }
 0x32c   : > { %1112 = vmatprep.mubr.msk.f32.mxu0 %vm1287_vm0, %v1288_v5  ;;  %1170 = vmatpush3.bf16.msra.mxu0 %v1169_v59 }
 0x32d   : > { %v628_v53 = vpop.permute.xlu0 %627  ;;  %1171 = vmatprep.subr.bf16.mxu0 %v1286_v3 }
 0x32e   : > { %v635_v54 = vsel %vm480_vm4, %v611_v45, %v628_v53 }
 0x32f   : > { %1113 = vmatmul.mubr.msk.f32.gmra.mrb[8].mxu0 %vm492_vm5, %v635_v54 }
 0x330   : > { %1115 = vmatprep.mubr.msk.f32.mxu0 %vm1287_vm0, %v1288_v5  ;;  %1173 = vmatpush3.bf16.msra.mxu0 %v1172_v61 }
 0x331   : > { %v630_v6 = vpop.permute.xlu1 %629 }
 0x332   : > { %v636_v55 = vsel %vm480_vm4, %v610_v50, %v630_v6 }
 0x333   : > { %1116 = vmatmul.mubr.msk.f32.gmra.mrb[10].mxu0 %vm492_vm5, %v636_v55 }
 0x334   : > { %1135 = vmatprep.mubr.msk.f32.mxu0 %vm1287_vm0, %v1288_v5 }
 0x33e   : > { %v744_v9 = vpop.permute.xlu0 %743 }
 0x342   : > { %v749_v11 = vpop.permute.xlu1 %748  ;;  %v754_v18 = vpop.permute.xlu0 %753 }
 0x3fe   : > { %v720_v63 = vpop.f32.mrb[6].mxu0 }
 0x3ff   : > { %v721_v0 = vadd.f32 %v1007_v62, %v720_v63  ;;  %v1111_v1 = vpop.f32.mrb[7].mxu0 }
 0x401   : > { %v734_v4 = vmax.f32 %v721_v0, 0.0 }
 0x402   : > { %v725_v2 = vpop.f32.mrb[8].mxu0 }
 0x403   : > { %v726_v7 = vadd.f32 %v1007_v62, %v725_v2  ;;  %v1114_v8 = vpop.f32.mrb[9].mxu0  ;;  %v756_v13 = vmul.f32 %v744_v9, %v734_v4 }
 0x405   : > { %v735_v10 = vmax.f32 %v726_v7, 0.0 }
 0x406   : > { %v730_v12 = vpop.f32.mrb[10].mxu0 }
 0x407   : > { %v757_v14 = vmul.f32 %v749_v11, %v735_v10  ;;  %v731_v3 = vadd.f32 %v1007_v62, %v730_v12  ;;  %v1117_v15 = vpop.f32.mrb[11].mxu0 }
 0x409   : > { %v1166_v16 = vpack.c.bf16 %v757_v14, %v756_v13  ;;  %v736_v17 = vmax.f32 %v731_v3, 0.0 }
 0x40b   : > { %1167 = vmatpush3.bf16.msra.mxu1 %v1166_v16  ;;  %v758_v19 = vmul.f32 %v754_v18, %v736_v17 }
 0x40c   : > { %1122 = vmatprep.subr.mxu1 %v1288_v5 }
 0x40f   : > { %1123 = vmatpush3.msra.mxu1 %v758_v19 }
 0x410   : > { %1125 = vmatmul.mubr.msk.f32.vlgmr.msra.gmra.mrb[6].mxu1 %vm760_vm6, %v759_v20 }
 0x4e3   : > { %v830_v21 = vpop.f32.mrb[6].mxu1 }
 0x4e4   : > { %v1126_v22 = vpop.f32.mrb[7].mxu1  ;;  %1136 = vmatmul.mubr.msk.f32.vlgmr.msra.gmra.mrb[12].mxu0 %vm480_vm4, %v830_v21 }
 0x5b7   : > { %v908_v5 = vpop.f32.mrb[12].mxu0 }
 0x5b8   : > { %v909_v24 = vadd.f32 %v908_v5, %v838_v23  ;;  %v1137_v25 = vpop.f32.mrb[13].mxu0 }
 0x5ba   : > { %912 = vst [vmem:[%s297_s21] sm:$0x1] %v909_v24 }
 0x5bb   : > { %1235 = shalt.err (!%p1232_p3)
}
 0x5bc   : > { %s1236_s18 = scalar_lea.hbm %s1579_s26, 16  ;;  %s1240_s20 = scalar_lea.hbm %s1629_s8, 32 }
 0x5bd   : > { %p1237_p4 = scmp.ne.s32.totalorder %s1579_s26, %s1236_s18  ;;  %p1241_p9 = scmp.lt.u32.totalorder %s1579_s26, %s1629_s8 }
 0x5be   : > { %p1242_p10 = scmp.lt.u32.totalorder %s1240_s20, %s1236_s18  ;;  %p1244_p12 = scmp.lt.u32.totalorder %s1236_s18, %s1579_s26 }
 0x5bf   : > { %p1238_p7 = pnand %p1237_p4, %p1376_p5 }
 0x5c0   : > { %p1243_p11 = por %p1242_p10, %p1241_p9 }
 0x5c1   : > { %p1239_p8 = pneg %p1238_p7 }
 0x5c2   : > { %p1245_p13 = por %p1244_p12, %p1243_p11 }
 0x5c4   : > { %p1246_p0 = pnand %p1245_p13, %p1239_p8 }
 0x5c6   : > { %1249 = shalt.err (!%p1246_p0)
}
 0x5c7   : > { %1175 = dma.vmem_to_hbm [thread:$0]  (%p1376_p5), %s1581_s22, 16, %s1579_s26, %s914_s10  }
 0x5c8 PF: > { %p1181_p1 = scmp.ge.s32.totalorder %s1284_s30, 2  ;;  %s938_s24 = sand.u32 1, %s1272_s27  }
 0x5c9   : > { %s939_s12 = scalar_lea.sflag [#allocation3], %s938_s24 }
 0x5ca   : > { %p1178_p2 = pnand %p1181_p1, %p1380_p6 }
 0x5cc   : > { %1267 = dma.done.wait (!%p1178_p2), %s939_s12, 16  }
 0x5cd   : > { %1269 = vsyncadd (!%p1178_p2), %s939_s12, 4294967280  ;;  %p18_p3 = scmp.ge.s32.totalorder %s1363_s11, 4   ;;  %s1632_s27 = smov %s1276_s28 }
 0x5ce   : > { %s1633_s28 = smov %s1280_s29  ;;  %s1634_s29 = smov %s1374_s14 }
 0x5cf   : > { %s1635_s30 = smov %s1363_s11  ;;  %20 = sbr.rel (!%p18_p3) target bundleno = 3 (0x3), region = 92 }
 0x5d6   :  { %943 = vsyncpa [#allocation3], 1 }
 0x5d7   :  { %945 = vsyncpa [#allocation3 + $0x1], 1 }

</bundles_post_ra>
